<compile_context>
chip_gen: v7x
topology: tpu7x:2x2x1
jax: 0.10.0
libtpu: 0.0.40
codegen_flags: <defaults>
</compile_context>

<pallas_src>
import numpy as np
import jax
import jax.numpy as jnp
from jax.experimental import pallas as pl
from jax.experimental.pallas import tpu as pltpu


def _lagrange_constants(n_order):
    """Reference nodes and the constant 1/prod(nodes[j]-nodes[m]) factors."""
    nodes = np.linspace(-1.0, 1.0, n_order + 1)
    c = np.ones(n_order + 1, dtype=np.float64)
    for j in range(n_order + 1):
        for m in range(n_order + 1):
            if m != j:
                c[j] /= (nodes[j] - nodes[m])
    return nodes, c


def make_lagrange_kann_kernel(n_width, n_order, n_elements, n_nodes,
                              s_tile, x_min, x_max):
    """Builds the Pallas kernel body for a fixed configuration."""
    nodes, c = _lagrange_constants(n_order)
    delta_x = 0.5 * n_order * (x_max - x_min) / (n_nodes - 1)
    inv_dx1 = 1.0 / float(delta_x)
    inv_dx2 = inv_dx1 * inv_dx1

    W, P, S = n_width, n_nodes, s_tile
    shift_scale = float((n_nodes - 1) / (x_max - x_min))   # fold shift constants
    inv_order = 1.0 / float(n_order)
    ref_scale = 2.0 / float(n_order)

    def kernel(x_ref, w_ref, t_ref, dt_ref, ddt_ref,
               phi_ref, dphi_ref, ddphi_ref):
        x = x_ref[...]                                 # (W, S) f32, lane-dense

        # ----- shift to natural coordinates & locate element (constants folded)
        x_shift = (x - x_min) * shift_scale
        id_f = jnp.clip(jnp.floor(x_shift * inv_order), 0.0, float(n_elements - 1))
        id_i = id_f.astype(jnp.int32)                  # element id   (W, S)
        nl_f = id_f * float(n_order)                   # left node, float
        nl_i = id_i * n_order                          # left node, int32
        xt = (x_shift - nl_f) * ref_scale - 1.0        # reference coord in [-1, 1]

        # ----- Lagrange basis + derivatives, all constant denominators folded
        diff = [xt - float(nodes[m]) for m in range(n_order + 1)]

        phi_loc, dphi_loc, ddphi_loc = [], [], []
        for j in range(n_order + 1):
            # phi_j = c_j * prod_{m!=j} (xt - nodes[m])
            p = None
            for m in range(n_order + 1):
                if m != j:
                    p = diff[m] if p is None else p * diff[m]
            p = jnp.ones_like(xt) if p is None else p
            phi_loc.append(float(c[j]) * p)

            # dphi_j/dx = (c_j/dx) * sum_{i!=j} prod_{m!=i,j} (xt - nodes[m])
            y1 = None
            for i in range(n_order + 1):
                if i != j:
                    term = None
                    for m in range(n_order + 1):
                        if m != i and m != j:
                            term = diff[m] if term is None else term * diff[m]
                    term = jnp.ones_like(xt) if term is None else term
                    y1 = term if y1 is None else y1 + term
            y1 = jnp.zeros_like(xt) if y1 is None else y1
            dphi_loc.append(float(c[j] * inv_dx1) * y1)

            # ddphi_j/dx^2 = (c_j/dx^2) * sum_{i!=j} sum_{m!=i,j}
            #                              prod_{n!=i,j,m} (xt - nodes[n])
            y2 = None
            for i in range(n_order + 1):
                if i != j:
                    for m in range(n_order + 1):
                        if m != i and m != j:
                            term = None
                            for n in range(n_order + 1):
                                if n != i and n != j and n != m:
                                    term = diff[n] if term is None else term * diff[n]
                            term = jnp.ones_like(xt) if term is None else term
                            y2 = term if y2 is None else y2 + term
            y2 = jnp.zeros_like(xt) if y2 is None else y2
            ddphi_loc.append(float(c[j] * inv_dx2) * y2)

        # ----- scatter local basis into global node basis, (W, P, S) lane-dense
        # offset[k, p, i] = p - node_l[k, i]; the j-masks are disjoint, so
        # additive accumulation (independent adds, better ILP) is exact.
        p_iota = jax.lax.broadcasted_iota(jnp.int32, (W, P, S), 1)
        offset = p_iota - nl_i[:, None, :]             # (W, P, S) int32
        phi = jnp.zeros((W, P, S), jnp.float32)
        dphi = jnp.zeros((W, P, S), jnp.float32)
        ddphi = jnp.zeros((W, P, S), jnp.float32)
        for j in range(n_order + 1):
            mask = offset == j
            phi = phi + jnp.where(mask, phi_loc[j][:, None, :], 0.0)
            dphi = dphi + jnp.where(mask, dphi_loc[j][:, None, :], 0.0)
            ddphi = ddphi + jnp.where(mask, ddphi_loc[j][:, None, :], 0.0)
        phi_ref[...] = phi
        dphi_ref[...] = dphi
        ddphi_ref[...] = ddphi

        # ----- fused contraction: t[k,i] = sum_j w[k, nl+j] * phi_loc[j][k,i]
        # Gather w[k, nl+j] by an n_elements-way compare/select on (W,S) data,
        # reusing one (id == e) compare per element for all local nodes j,
        # instead of re-reading three (W,P,S) tensors and reducing over P.
        w = w_ref[...]                                 # (W, P)
        wj = [jnp.zeros((W, S), jnp.float32) for _ in range(n_order + 1)]
        for e in range(n_elements):
            sel = id_i == e                            # (W, S) bool, one per elem
            for j in range(n_order + 1):
                idx = e * n_order + j
                col = w[:, idx:idx + 1]                # (W, 1), static slice
                wj[j] = jnp.where(sel, col, wj[j])     # lane-broadcast select
        t = jnp.zeros((W, S), jnp.float32)
        dt = jnp.zeros((W, S), jnp.float32)
        ddt = jnp.zeros((W, S), jnp.float32)
        for j in range(n_order + 1):
            t = t + phi_loc[j] * wj[j]
            dt = dt + dphi_loc[j] * wj[j]
            ddt = ddt + ddphi_loc[j] * wj[j]
        t_ref[...] = t
        dt_ref[...] = dt
        ddt_ref[...] = ddt

    return kernel, float(delta_x)


def _choose_tiling(n_samples):
    """Pick (padded S, lane tile).  Small S -> one whole-array block; large S
    -> 512-lane tiles with padding to a multiple of 512 (dense 128-lane vst)."""
    if n_samples <= 1024:
        return n_samples, n_samples
    tile = 512
    padded = ((n_samples + tile - 1) // tile) * tile
    return padded, tile


def lagrange_kann_forward(x, weight, *, n_width, n_order, n_elements,
                          n_samples, x_min, x_max):
    """Wrapper matching LagrangeKANN.forward semantics."""
    n_nodes = n_elements * n_order + 1

    # Mirror the PyTorch: if x is not 2D, repeat along a new width axis.
    if x.ndim != 2:
        x = jnp.repeat(x[..., None], n_width, axis=-1)
    x = x.astype(jnp.float32)
    weight = weight.astype(jnp.float32)

    S, W, P = n_samples, n_width, n_nodes
    S_pad, s_tile = _choose_tiling(S)
    n_blocks = S_pad // s_tile

    kernel, delta_x = make_lagrange_kann_kernel(
        W, n_order, n_elements, P, s_tile, x_min, x_max)

    # Lane-dense internal layout: sample axis last.  Pad the lane axis so the
    # grid tiles it exactly; padding is sliced off below.
    x_t = x.T                                          # (W, S)
    if S_pad != S:
        x_t = jnp.pad(x_t, ((0, 0), (0, S_pad - S)),
                      constant_values=float(x_min))

    out_shape = (
        jax.ShapeDtypeStruct((W, S_pad), jnp.float32),     # t
        jax.ShapeDtypeStruct((W, S_pad), jnp.float32),     # dt
        jax.ShapeDtypeStruct((W, S_pad), jnp.float32),     # ddt
        jax.ShapeDtypeStruct((W, P, S_pad), jnp.float32),  # phi
        jax.ShapeDtypeStruct((W, P, S_pad), jnp.float32),  # dphi
        jax.ShapeDtypeStruct((W, P, S_pad), jnp.float32),  # ddphi
    )

    ws_spec = pl.BlockSpec((W, s_tile), lambda i: (0, i))
    wps_spec = pl.BlockSpec((W, P, s_tile), lambda i: (0, 0, i))
    w_spec = pl.BlockSpec((W, P), lambda i: (0, 0))

    t, dt, ddt, phi, dphi, ddphi = pl.pallas_call(
        kernel,
        out_shape=out_shape,
        grid=(n_blocks,),
        in_specs=[ws_spec, w_spec],
        out_specs=(ws_spec, ws_spec, ws_spec, wps_spec, wps_spec, wps_spec),
        compiler_params=pltpu.CompilerParams(
            dimension_semantics=("parallel",),
            vmem_limit_bytes=64 * 1024 * 1024),
    )(x_t, weight)

    if S_pad != S:
        t, dt, ddt = t[:, :S], dt[:, :S], ddt[:, :S]
        phi, dphi, ddphi = phi[:, :, :S], dphi[:, :, :S], ddphi[:, :, :S]

    # Transpose back to the module's (n_samples, n_width[, n_nodes]) interface.
    return {
        't_ik': t.T, 'dt_ik': dt.T, 'ddt_ik': ddt.T,
        'phi_ikp': jnp.transpose(phi, (2, 0, 1)),
        'dphi_ikp': jnp.transpose(dphi, (2, 0, 1)),
        'ddphi_ikp': jnp.transpose(ddphi, (2, 0, 1)),
        'delta_x': delta_x,
    }


def _reference_forward(x, weight, *, n_width, n_order, n_elements,
                       n_samples, x_min, x_max):
    """Plain-JAX reference (original formulation) for the correctness check."""
    n_nodes = n_elements * n_order + 1
    if x.ndim != 2:
        x = jnp.repeat(x[..., None], n_width, axis=-1)
    x = x.astype(jnp.float32)
    nodes = np.linspace(-1.0, 1.0, n_order + 1)
    delta_x = 0.5 * n_order * (x_max - x_min) / (n_nodes - 1)

    x_shift = (n_nodes - 1) * (x - x_min) / (x_max - x_min)
    id_elem = jnp.clip(jnp.floor(x_shift / n_order), 0.0, float(n_elements - 1))
    nl_f = id_elem * n_order
    nl_i = nl_f.astype(jnp.int32)
    nr_f = nl_f + n_order
    xt = (x_shift - 0.5 * (nl_f + nr_f)) / (0.5 * (nr_f - nl_f))

    def lag(j):
        p = jnp.ones_like(xt)
        for m in range(n_order + 1):
            if m != j:
                p = p * (xt - nodes[m]) / (nodes[j] - nodes[m])
        return p

    def dlag(j):
        y = jnp.zeros_like(xt)
        for i in range(n_order + 1):
            if i != j:
                k = jnp.full_like(xt, 1.0 / (nodes[j] - nodes[i]))
                for m in range(n_order + 1):
                    if m != i and m != j:
                        k = k * (xt - nodes[m]) / (nodes[j] - nodes[m])
                y = y + k
        return y

    def ddlag(j):
        y = jnp.zeros_like(xt)
        for i in range(n_order + 1):
            if i != j:
                ks = jnp.zeros_like(xt)
                for m in range(n_order + 1):
                    if m != i and m != j:
                        kp = jnp.full_like(xt, 1.0 / (nodes[j] - nodes[m]))
                        for n in range(n_order + 1):
                            if n != i and n != j and n != m:
                                kp = kp * (xt - nodes[n]) / (nodes[j] - nodes[n])
                        ks = ks + kp
                y = y + (1.0 / (nodes[j] - nodes[i])) * ks
        return y

    S, W, P = n_samples, n_width, n_nodes
    p_iota = jax.lax.broadcasted_iota(jnp.int32, (S, W, P), 2)
    phi = jnp.zeros((S, W, P), jnp.float32)
    dphi = jnp.zeros((S, W, P), jnp.float32)
    ddphi = jnp.zeros((S, W, P), jnp.float32)
    for j in range(n_order + 1):
        mask = p_iota == (nl_i[:, :, None] + j)
        phi = phi + jnp.where(mask, lag(j)[:, :, None], 0.0)
        dphi = dphi + jnp.where(mask, dlag(j)[:, :, None] / delta_x, 0.0)
        ddphi = ddphi + jnp.where(mask, ddlag(j)[:, :, None] / delta_x ** 2, 0.0)

    t = jnp.einsum('kp,ikp->ik', weight, phi)
    dt = jnp.einsum('kp,ikp->ik', weight, dphi)
    ddt = jnp.einsum('kp,ikp->ik', weight, ddphi)
    return {'t_ik': t, 'dt_ik': dt, 'ddt_ik': ddt,
            'phi_ikp': phi, 'dphi_ikp': dphi, 'ddphi_ikp': ddphi}


if __name__ == "__main__":
    # Small deterministic configuration.
    n_samples = 8
    n_width = 4
    n_order = 2
    n_elements = 5
    n_nodes = n_elements * n_order + 1   # 11
    x_min, x_max = -1.0, 1.0

    key = jax.random.PRNGKey(0)
    kx, kw = jax.random.split(key)
    # 1-D input → forward repeats it across n_width (as in the module).
    x = jax.random.uniform(kx, (n_samples,), minval=x_min, maxval=x_max,
                           dtype=jnp.float32)
    # The module initializes weight to zeros; use a deterministic non-zero
    # init here so t_ik/dt_ik/ddt_ik are non-trivial.
    weight = 0.1 * jax.random.normal(kw, (n_width, n_nodes), dtype=jnp.float32)

    out = lagrange_kann_forward(
        x, weight, n_width=n_width, n_order=n_order, n_elements=n_elements,
        n_samples=n_samples, x_min=x_min, x_max=x_max)
    jax.block_until_ready(out)

    ref = _reference_forward(
        x, weight, n_width=n_width, n_order=n_order, n_elements=n_elements,
        n_samples=n_samples, x_min=x_min, x_max=x_max)

    for name in ('t_ik', 'dt_ik', 'ddt_ik', 'phi_ikp', 'dphi_ikp', 'ddphi_ikp'):
        np.testing.assert_allclose(np.asarray(out[name]), np.asarray(ref[name]),
                                   rtol=2e-5, atol=2e-5)

    print("KERNEL_OK")
</pallas_src>

<mosaic_0001>
module attributes {stable_mosaic.version = 11 : i64} {
  func.func @kernel(%arg0: i32, %arg1: memref<4x8xf32, #tpu.memory_space<vmem>>, %arg2: memref<4x11xf32, #tpu.memory_space<vmem>>, %arg3: memref<4x8xf32, #tpu.memory_space<vmem>>, %arg4: memref<4x8xf32, #tpu.memory_space<vmem>>, %arg5: memref<4x8xf32, #tpu.memory_space<vmem>>, %arg6: memref<4x11x8xf32, #tpu.memory_space<vmem>>, %arg7: memref<4x11x8xf32, #tpu.memory_space<vmem>>, %arg8: memref<4x11x8xf32, #tpu.memory_space<vmem>>) attributes {dimension_semantics = [#tpu.dimension_semantics<parallel>], iteration_bounds = array<i64: 1>, scalar_prefetch = 0 : i64, scratch_operands = 0 : i64, tpu.core_type = #tpu.core_type<tc>, window_params = [{transform_indices = @transform_0, window_bounds = array<i64: 4, 8>}, {pipeline_mode = #tpu.pipeline_mode<synchronous>, transform_indices = @transform_1, window_bounds = array<i64: 4, 11>}, {transform_indices = @transform_2, window_bounds = array<i64: 4, 8>}, {transform_indices = @transform_3, window_bounds = array<i64: 4, 8>}, {transform_indices = @transform_4, window_bounds = array<i64: 4, 8>}, {transform_indices = @transform_5, window_bounds = array<i64: 4, 11, 8>}, {transform_indices = @transform_6, window_bounds = array<i64: 4, 11, 8>}, {transform_indices = @transform_7, window_bounds = array<i64: 4, 11, 8>}]} {
    %c0 = arith.constant 0 : index
    %c0_0 = arith.constant 0 : index
    %0 = vector.load %arg1[%c0, %c0_0] : memref<4x8xf32, #tpu.memory_space<vmem>>, vector<4x8xf32>
    %cst = arith.constant -1.000000e+00 : f32
    %1 = vector.broadcast %cst : f32 to vector<4x8xf32>
    %2 = arith.subf %0, %1 : vector<4x8xf32>
    %cst_1 = arith.constant 5.000000e+00 : f32
    %3 = vector.broadcast %cst_1 : f32 to vector<4x8xf32>
    %4 = arith.mulf %2, %3 : vector<4x8xf32>
    %cst_2 = arith.constant 5.000000e-01 : f32
    %5 = vector.broadcast %cst_2 : f32 to vector<4x8xf32>
    %6 = arith.mulf %4, %5 : vector<4x8xf32>
    %7 = math.floor %6 : vector<4x8xf32>
    %cst_3 = arith.constant 0.000000e+00 : f32
    %cst_4 = arith.constant 4.000000e+00 : f32
    %8 = vector.broadcast %cst_3 : f32 to vector<4x8xf32>
    %9 = arith.maximumf %8, %7 : vector<4x8xf32>
    %10 = vector.broadcast %cst_4 : f32 to vector<4x8xf32>
    %11 = arith.minimumf %10, %9 : vector<4x8xf32>
    %12 = arith.fptosi %11 : vector<4x8xf32> to vector<4x8xi32>
    %cst_5 = arith.constant 2.000000e+00 : f32
    %13 = vector.broadcast %cst_5 : f32 to vector<4x8xf32>
    %14 = arith.mulf %11, %13 : vector<4x8xf32>
    %c2_i32 = arith.constant 2 : i32
    %15 = vector.broadcast %c2_i32 : i32 to vector<4x8xi32>
    %16 = arith.muli %12, %15 : vector<4x8xi32>
    %17 = arith.subf %4, %14 : vector<4x8xf32>
    %cst_6 = arith.constant 1.000000e+00 : f32
    %18 = vector.broadcast %cst_6 : f32 to vector<4x8xf32>
    %19 = arith.mulf %17, %18 : vector<4x8xf32>
    %cst_7 = arith.constant 1.000000e+00 : f32
    %20 = vector.broadcast %cst_7 : f32 to vector<4x8xf32>
    %21 = arith.subf %19, %20 : vector<4x8xf32>
    %cst_8 = arith.constant -1.000000e+00 : f32
    %22 = vector.broadcast %cst_8 : f32 to vector<4x8xf32>
    %23 = arith.subf %21, %22 : vector<4x8xf32>
    %cst_9 = arith.constant 0.000000e+00 : f32
    %24 = vector.broadcast %cst_9 : f32 to vector<4x8xf32>
    %25 = arith.subf %21, %24 : vector<4x8xf32>
    %cst_10 = arith.constant 1.000000e+00 : f32
    %26 = vector.broadcast %cst_10 : f32 to vector<4x8xf32>
    %27 = arith.subf %21, %26 : vector<4x8xf32>
    %28 = arith.mulf %25, %27 : vector<4x8xf32>
    %cst_11 = arith.constant 5.000000e-01 : f32
    %29 = vector.broadcast %cst_11 : f32 to vector<4x8xf32>
    %30 = arith.mulf %29, %28 : vector<4x8xf32>
    %31 = arith.addf %27, %25 : vector<4x8xf32>
    %cst_12 = arith.constant 2.500000e+00 : f32
    %32 = vector.broadcast %cst_12 : f32 to vector<4x8xf32>
    %33 = arith.mulf %32, %31 : vector<4x8xf32>
    %cst_13 = arith.constant 1.000000e+00 : f32
    %34 = vector.broadcast %cst_13 : f32 to vector<4x8xf32>
    %cst_14 = arith.constant 1.000000e+00 : f32
    %35 = vector.broadcast %cst_14 : f32 to vector<4x8xf32>
    %36 = arith.addf %34, %35 : vector<4x8xf32>
    %cst_15 = arith.constant 1.250000e+01 : f32
    %37 = vector.broadcast %cst_15 : f32 to vector<4x8xf32>
    %38 = arith.mulf %37, %36 : vector<4x8xf32>
    %39 = arith.mulf %23, %27 : vector<4x8xf32>
    %cst_16 = arith.constant -1.000000e+00 : f32
    %40 = vector.broadcast %cst_16 : f32 to vector<4x8xf32>
    %41 = arith.mulf %40, %39 : vector<4x8xf32>
    %42 = arith.addf %27, %23 : vector<4x8xf32>
    %cst_17 = arith.constant -5.000000e+00 : f32
    %43 = vector.broadcast %cst_17 : f32 to vector<4x8xf32>
    %44 = arith.mulf %43, %42 : vector<4x8xf32>
    %cst_18 = arith.constant 1.000000e+00 : f32
    %45 = vector.broadcast %cst_18 : f32 to vector<4x8xf32>
    %cst_19 = arith.constant 1.000000e+00 : f32
    %46 = vector.broadcast %cst_19 : f32 to vector<4x8xf32>
    %47 = arith.addf %45, %46 : vector<4x8xf32>
    %cst_20 = arith.constant -2.500000e+01 : f32
    %48 = vector.broadcast %cst_20 : f32 to vector<4x8xf32>
    %49 = arith.mulf %48, %47 : vector<4x8xf32>
    %50 = arith.mulf %23, %25 : vector<4x8xf32>
    %cst_21 = arith.constant 5.000000e-01 : f32
    %51 = vector.broadcast %cst_21 : f32 to vector<4x8xf32>
    %52 = arith.mulf %51, %50 : vector<4x8xf32>
    %53 = arith.addf %25, %23 : vector<4x8xf32>
    %cst_22 = arith.constant 2.500000e+00 : f32
    %54 = vector.broadcast %cst_22 : f32 to vector<4x8xf32>
    %55 = arith.mulf %54, %53 : vector<4x8xf32>
    %cst_23 = arith.constant 1.000000e+00 : f32
    %56 = vector.broadcast %cst_23 : f32 to vector<4x8xf32>
    %cst_24 = arith.constant 1.000000e+00 : f32
    %57 = vector.broadcast %cst_24 : f32 to vector<4x8xf32>
    %58 = arith.addf %56, %57 : vector<4x8xf32>
    %cst_25 = arith.constant 1.250000e+01 : f32
    %59 = vector.broadcast %cst_25 : f32 to vector<4x8xf32>
    %60 = arith.mulf %59, %58 : vector<4x8xf32>
    %61 = tpu.iota {dimensions = array<i32: 1>} : vector<4x11x8xi32>
    %62 = vector.shape_cast %16 : vector<4x8xi32> to vector<4x1x8xi32>
    %63 = vector.broadcast %62 : vector<4x1x8xi32> to vector<4x11x8xi32>
    %64 = arith.subi %61, %63 : vector<4x11x8xi32>
    %cst_26 = arith.constant 0.000000e+00 : f32
    %65 = vector.broadcast %cst_26 : f32 to vector<4x11x8xf32>
    %cst_27 = arith.constant 0.000000e+00 : f32
    %66 = vector.broadcast %cst_27 : f32 to vector<4x11x8xf32>
    %cst_28 = arith.constant 0.000000e+00 : f32
    %67 = vector.broadcast %cst_28 : f32 to vector<4x11x8xf32>
    %c0_i32 = arith.constant 0 : i32
    %68 = vector.broadcast %c0_i32 : i32 to vector<4x11x8xi32>
    %69 = arith.cmpi eq, %64, %68 : vector<4x11x8xi32>
    %70 = vector.shape_cast %30 : vector<4x8xf32> to vector<4x1x8xf32>
    %cst_29 = arith.constant 0.000000e+00 : f32
    %71 = vector.shape_cast %70 : vector<4x1x8xf32> to vector<4x1x8xf32>
    %72 = vector.broadcast %71 : vector<4x1x8xf32> to vector<4x11x8xf32>
    %73 = vector.broadcast %cst_29 : f32 to vector<4x11x8xf32>
    %74 = arith.select %69, %72, %73 : vector<4x11x8xi1>, vector<4x11x8xf32>
    %75 = arith.addf %65, %74 : vector<4x11x8xf32>
    %76 = vector.shape_cast %33 : vector<4x8xf32> to vector<4x1x8xf32>
    %cst_30 = arith.constant 0.000000e+00 : f32
    %77 = vector.shape_cast %76 : vector<4x1x8xf32> to vector<4x1x8xf32>
    %78 = vector.broadcast %77 : vector<4x1x8xf32> to vector<4x11x8xf32>
    %79 = vector.broadcast %cst_30 : f32 to vector<4x11x8xf32>
    %80 = arith.select %69, %78, %79 : vector<4x11x8xi1>, vector<4x11x8xf32>
    %81 = arith.addf %66, %80 : vector<4x11x8xf32>
    %82 = vector.shape_cast %38 : vector<4x8xf32> to vector<4x1x8xf32>
    %cst_31 = arith.constant 0.000000e+00 : f32
    %83 = vector.shape_cast %82 : vector<4x1x8xf32> to vector<4x1x8xf32>
    %84 = vector.broadcast %83 : vector<4x1x8xf32> to vector<4x11x8xf32>
    %85 = vector.broadcast %cst_31 : f32 to vector<4x11x8xf32>
    %86 = arith.select %69, %84, %85 : vector<4x11x8xi1>, vector<4x11x8xf32>
    %87 = arith.addf %67, %86 : vector<4x11x8xf32>
    %c1_i32 = arith.constant 1 : i32
    %88 = vector.broadcast %c1_i32 : i32 to vector<4x11x8xi32>
    %89 = arith.cmpi eq, %64, %88 : vector<4x11x8xi32>
    %90 = vector.shape_cast %41 : vector<4x8xf32> to vector<4x1x8xf32>
    %cst_32 = arith.constant 0.000000e+00 : f32
    %91 = vector.shape_cast %90 : vector<4x1x8xf32> to vector<4x1x8xf32>
    %92 = vector.broadcast %91 : vector<4x1x8xf32> to vector<4x11x8xf32>
    %93 = vector.broadcast %cst_32 : f32 to vector<4x11x8xf32>
    %94 = arith.select %89, %92, %93 : vector<4x11x8xi1>, vector<4x11x8xf32>
    %95 = arith.addf %75, %94 : vector<4x11x8xf32>
    %96 = vector.shape_cast %44 : vector<4x8xf32> to vector<4x1x8xf32>
    %cst_33 = arith.constant 0.000000e+00 : f32
    %97 = vector.shape_cast %96 : vector<4x1x8xf32> to vector<4x1x8xf32>
    %98 = vector.broadcast %97 : vector<4x1x8xf32> to vector<4x11x8xf32>
    %99 = vector.broadcast %cst_33 : f32 to vector<4x11x8xf32>
    %100 = arith.select %89, %98, %99 : vector<4x11x8xi1>, vector<4x11x8xf32>
    %101 = arith.addf %81, %100 : vector<4x11x8xf32>
    %102 = vector.shape_cast %49 : vector<4x8xf32> to vector<4x1x8xf32>
    %cst_34 = arith.constant 0.000000e+00 : f32
    %103 = vector.shape_cast %102 : vector<4x1x8xf32> to vector<4x1x8xf32>
    %104 = vector.broadcast %103 : vector<4x1x8xf32> to vector<4x11x8xf32>
    %105 = vector.broadcast %cst_34 : f32 to vector<4x11x8xf32>
    %106 = arith.select %89, %104, %105 : vector<4x11x8xi1>, vector<4x11x8xf32>
    %107 = arith.addf %87, %106 : vector<4x11x8xf32>
    %c2_i32_35 = arith.constant 2 : i32
    %108 = vector.broadcast %c2_i32_35 : i32 to vector<4x11x8xi32>
    %109 = arith.cmpi eq, %64, %108 : vector<4x11x8xi32>
    %110 = vector.shape_cast %52 : vector<4x8xf32> to vector<4x1x8xf32>
    %cst_36 = arith.constant 0.000000e+00 : f32
    %111 = vector.shape_cast %110 : vector<4x1x8xf32> to vector<4x1x8xf32>
    %112 = vector.broadcast %111 : vector<4x1x8xf32> to vector<4x11x8xf32>
    %113 = vector.broadcast %cst_36 : f32 to vector<4x11x8xf32>
    %114 = arith.select %109, %112, %113 : vector<4x11x8xi1>, vector<4x11x8xf32>
    %115 = arith.addf %95, %114 : vector<4x11x8xf32>
    %116 = vector.shape_cast %55 : vector<4x8xf32> to vector<4x1x8xf32>
    %cst_37 = arith.constant 0.000000e+00 : f32
    %117 = vector.shape_cast %116 : vector<4x1x8xf32> to vector<4x1x8xf32>
    %118 = vector.broadcast %117 : vector<4x1x8xf32> to vector<4x11x8xf32>
    %119 = vector.broadcast %cst_37 : f32 to vector<4x11x8xf32>
    %120 = arith.select %109, %118, %119 : vector<4x11x8xi1>, vector<4x11x8xf32>
    %121 = arith.addf %101, %120 : vector<4x11x8xf32>
    %122 = vector.shape_cast %60 : vector<4x8xf32> to vector<4x1x8xf32>
    %cst_38 = arith.constant 0.000000e+00 : f32
    %123 = vector.shape_cast %122 : vector<4x1x8xf32> to vector<4x1x8xf32>
    %124 = vector.broadcast %123 : vector<4x1x8xf32> to vector<4x11x8xf32>
    %125 = vector.broadcast %cst_38 : f32 to vector<4x11x8xf32>
    %126 = arith.select %109, %124, %125 : vector<4x11x8xi1>, vector<4x11x8xf32>
    %127 = arith.addf %107, %126 : vector<4x11x8xf32>
    %c0_39 = arith.constant 0 : index
    %c0_40 = arith.constant 0 : index
    %c0_41 = arith.constant 0 : index
    %128 = vector.load %arg6[%c0_39, %c0_40, %c0_41] : memref<4x11x8xf32, #tpu.memory_space<vmem>>, vector<4x11x8xf32>
    tpu.vector_store %arg6[%c0_39, %c0_40, %c0_41], %115 {strides = array<i32>} : memref<4x11x8xf32, #tpu.memory_space<vmem>>, vector<4x11x8xf32>,
    %c0_42 = arith.constant 0 : index
    %c0_43 = arith.constant 0 : index
    %c0_44 = arith.constant 0 : index
    %129 = vector.load %arg7[%c0_42, %c0_43, %c0_44] : memref<4x11x8xf32, #tpu.memory_space<vmem>>, vector<4x11x8xf32>
    tpu.vector_store %arg7[%c0_42, %c0_43, %c0_44], %121 {strides = array<i32>} : memref<4x11x8xf32, #tpu.memory_space<vmem>>, vector<4x11x8xf32>,
    %c0_45 = arith.constant 0 : index
    %c0_46 = arith.constant 0 : index
    %c0_47 = arith.constant 0 : index
    %130 = vector.load %arg8[%c0_45, %c0_46, %c0_47] : memref<4x11x8xf32, #tpu.memory_space<vmem>>, vector<4x11x8xf32>
    tpu.vector_store %arg8[%c0_45, %c0_46, %c0_47], %127 {strides = array<i32>} : memref<4x11x8xf32, #tpu.memory_space<vmem>>, vector<4x11x8xf32>,
    %c0_48 = arith.constant 0 : index
    %c0_49 = arith.constant 0 : index
    %131 = vector.load %arg2[%c0_48, %c0_49] : memref<4x11xf32, #tpu.memory_space<vmem>>, vector<4x11xf32>
    %cst_50 = arith.constant 0.000000e+00 : f32
    %132 = vector.broadcast %cst_50 : f32 to vector<4x8xf32>
    %cst_51 = arith.constant 0.000000e+00 : f32
    %133 = vector.broadcast %cst_51 : f32 to vector<4x8xf32>
    %cst_52 = arith.constant 0.000000e+00 : f32
    %134 = vector.broadcast %cst_52 : f32 to vector<4x8xf32>
    %c0_i32_53 = arith.constant 0 : i32
    %135 = vector.broadcast %c0_i32_53 : i32 to vector<4x8xi32>
    %136 = arith.cmpi eq, %12, %135 : vector<4x8xi32>
    %137 = vector.extract_strided_slice %131 {offsets = [0, 0], sizes = [4, 1], strides = [1, 1]} : vector<4x11xf32> to vector<4x1xf32>
    %138 = vector.shape_cast %137 : vector<4x1xf32> to vector<4x1xf32>
    %139 = vector.broadcast %138 : vector<4x1xf32> to vector<4x8xf32>
    %140 = arith.select %136, %139, %132 : vector<4x8xi1>, vector<4x8xf32>
    %141 = vector.extract_strided_slice %131 {offsets = [0, 1], sizes = [4, 1], strides = [1, 1]} : vector<4x11xf32> to vector<4x1xf32>
    %142 = vector.shape_cast %141 : vector<4x1xf32> to vector<4x1xf32>
    %143 = vector.broadcast %142 : vector<4x1xf32> to vector<4x8xf32>
    %144 = arith.select %136, %143, %133 : vector<4x8xi1>, vector<4x8xf32>
    %145 = vector.extract_strided_slice %131 {offsets = [0, 2], sizes = [4, 1], strides = [1, 1]} : vector<4x11xf32> to vector<4x1xf32>
    %146 = vector.shape_cast %145 : vector<4x1xf32> to vector<4x1xf32>
    %147 = vector.broadcast %146 : vector<4x1xf32> to vector<4x8xf32>
    %148 = arith.select %136, %147, %134 : vector<4x8xi1>, vector<4x8xf32>
    %c1_i32_54 = arith.constant 1 : i32
    %149 = vector.broadcast %c1_i32_54 : i32 to vector<4x8xi32>
    %150 = arith.cmpi eq, %12, %149 : vector<4x8xi32>
    %151 = vector.extract_strided_slice %131 {offsets = [0, 2], sizes = [4, 1], strides = [1, 1]} : vector<4x11xf32> to vector<4x1xf32>
    %152 = vector.shape_cast %151 : vector<4x1xf32> to vector<4x1xf32>
    %153 = vector.broadcast %152 : vector<4x1xf32> to vector<4x8xf32>
    %154 = arith.select %150, %153, %140 : vector<4x8xi1>, vector<4x8xf32>
    %155 = vector.extract_strided_slice %131 {offsets = [0, 3], sizes = [4, 1], strides = [1, 1]} : vector<4x11xf32> to vector<4x1xf32>
    %156 = vector.shape_cast %155 : vector<4x1xf32> to vector<4x1xf32>
    %157 = vector.broadcast %156 : vector<4x1xf32> to vector<4x8xf32>
    %158 = arith.select %150, %157, %144 : vector<4x8xi1>, vector<4x8xf32>
    %159 = vector.extract_strided_slice %131 {offsets = [0, 4], sizes = [4, 1], strides = [1, 1]} : vector<4x11xf32> to vector<4x1xf32>
    %160 = vector.shape_cast %159 : vector<4x1xf32> to vector<4x1xf32>
    %161 = vector.broadcast %160 : vector<4x1xf32> to vector<4x8xf32>
    %162 = arith.select %150, %161, %148 : vector<4x8xi1>, vector<4x8xf32>
    %c2_i32_55 = arith.constant 2 : i32
    %163 = vector.broadcast %c2_i32_55 : i32 to vector<4x8xi32>
    %164 = arith.cmpi eq, %12, %163 : vector<4x8xi32>
    %165 = vector.extract_strided_slice %131 {offsets = [0, 4], sizes = [4, 1], strides = [1, 1]} : vector<4x11xf32> to vector<4x1xf32>
    %166 = vector.shape_cast %165 : vector<4x1xf32> to vector<4x1xf32>
    %167 = vector.broadcast %166 : vector<4x1xf32> to vector<4x8xf32>
    %168 = arith.select %164, %167, %154 : vector<4x8xi1>, vector<4x8xf32>
    %169 = vector.extract_strided_slice %131 {offsets = [0, 5], sizes = [4, 1], strides = [1, 1]} : vector<4x11xf32> to vector<4x1xf32>
    %170 = vector.shape_cast %169 : vector<4x1xf32> to vector<4x1xf32>
    %171 = vector.broadcast %170 : vector<4x1xf32> to vector<4x8xf32>
    %172 = arith.select %164, %171, %158 : vector<4x8xi1>, vector<4x8xf32>
    %173 = vector.extract_strided_slice %131 {offsets = [0, 6], sizes = [4, 1], strides = [1, 1]} : vector<4x11xf32> to vector<4x1xf32>
    %174 = vector.shape_cast %173 : vector<4x1xf32> to vector<4x1xf32>
    %175 = vector.broadcast %174 : vector<4x1xf32> to vector<4x8xf32>
    %176 = arith.select %164, %175, %162 : vector<4x8xi1>, vector<4x8xf32>
    %c3_i32 = arith.constant 3 : i32
    %177 = vector.broadcast %c3_i32 : i32 to vector<4x8xi32>
    %178 = arith.cmpi eq, %12, %177 : vector<4x8xi32>
    %179 = vector.extract_strided_slice %131 {offsets = [0, 6], sizes = [4, 1], strides = [1, 1]} : vector<4x11xf32> to vector<4x1xf32>
    %180 = vector.shape_cast %179 : vector<4x1xf32> to vector<4x1xf32>
    %181 = vector.broadcast %180 : vector<4x1xf32> to vector<4x8xf32>
    %182 = arith.select %178, %181, %168 : vector<4x8xi1>, vector<4x8xf32>
    %183 = vector.extract_strided_slice %131 {offsets = [0, 7], sizes = [4, 1], strides = [1, 1]} : vector<4x11xf32> to vector<4x1xf32>
    %184 = vector.shape_cast %183 : vector<4x1xf32> to vector<4x1xf32>
    %185 = vector.broadcast %184 : vector<4x1xf32> to vector<4x8xf32>
    %186 = arith.select %178, %185, %172 : vector<4x8xi1>, vector<4x8xf32>
    %187 = vector.extract_strided_slice %131 {offsets = [0, 8], sizes = [4, 1], strides = [1, 1]} : vector<4x11xf32> to vector<4x1xf32>
    %188 = vector.shape_cast %187 : vector<4x1xf32> to vector<4x1xf32>
    %189 = vector.broadcast %188 : vector<4x1xf32> to vector<4x8xf32>
    %190 = arith.select %178, %189, %176 : vector<4x8xi1>, vector<4x8xf32>
    %c4_i32 = arith.constant 4 : i32
    %191 = vector.broadcast %c4_i32 : i32 to vector<4x8xi32>
    %192 = arith.cmpi eq, %12, %191 : vector<4x8xi32>
    %193 = vector.extract_strided_slice %131 {offsets = [0, 8], sizes = [4, 1], strides = [1, 1]} : vector<4x11xf32> to vector<4x1xf32>
    %194 = vector.shape_cast %193 : vector<4x1xf32> to vector<4x1xf32>
    %195 = vector.broadcast %194 : vector<4x1xf32> to vector<4x8xf32>
    %196 = arith.select %192, %195, %182 : vector<4x8xi1>, vector<4x8xf32>
    %197 = vector.extract_strided_slice %131 {offsets = [0, 9], sizes = [4, 1], strides = [1, 1]} : vector<4x11xf32> to vector<4x1xf32>
    %198 = vector.shape_cast %197 : vector<4x1xf32> to vector<4x1xf32>
    %199 = vector.broadcast %198 : vector<4x1xf32> to vector<4x8xf32>
    %200 = arith.select %192, %199, %186 : vector<4x8xi1>, vector<4x8xf32>
    %201 = vector.extract_strided_slice %131 {offsets = [0, 10], sizes = [4, 1], strides = [1, 1]} : vector<4x11xf32> to vector<4x1xf32>
    %202 = vector.shape_cast %201 : vector<4x1xf32> to vector<4x1xf32>
    %203 = vector.broadcast %202 : vector<4x1xf32> to vector<4x8xf32>
    %204 = arith.select %192, %203, %190 : vector<4x8xi1>, vector<4x8xf32>
    %cst_56 = arith.constant 0.000000e+00 : f32
    %205 = vector.broadcast %cst_56 : f32 to vector<4x8xf32>
    %cst_57 = arith.constant 0.000000e+00 : f32
    %206 = vector.broadcast %cst_57 : f32 to vector<4x8xf32>
    %cst_58 = arith.constant 0.000000e+00 : f32
    %207 = vector.broadcast %cst_58 : f32 to vector<4x8xf32>
    %208 = arith.mulf %30, %196 : vector<4x8xf32>
    %209 = arith.addf %205, %208 : vector<4x8xf32>
    %210 = arith.mulf %33, %196 : vector<4x8xf32>
    %211 = arith.addf %206, %210 : vector<4x8xf32>
    %212 = arith.mulf %38, %196 : vector<4x8xf32>
    %213 = arith.addf %207, %212 : vector<4x8xf32>
    %214 = arith.mulf %41, %200 : vector<4x8xf32>
    %215 = arith.addf %209, %214 : vector<4x8xf32>
    %216 = arith.mulf %44, %200 : vector<4x8xf32>
    %217 = arith.addf %211, %216 : vector<4x8xf32>
    %218 = arith.mulf %49, %200 : vector<4x8xf32>
    %219 = arith.addf %213, %218 : vector<4x8xf32>
    %220 = arith.mulf %52, %204 : vector<4x8xf32>
    %221 = arith.addf %215, %220 : vector<4x8xf32>
    %222 = arith.mulf %55, %204 : vector<4x8xf32>
    %223 = arith.addf %217, %222 : vector<4x8xf32>
    %224 = arith.mulf %60, %204 : vector<4x8xf32>
    %225 = arith.addf %219, %224 : vector<4x8xf32>
    %c0_59 = arith.constant 0 : index
    %c0_60 = arith.constant 0 : index
    %226 = vector.load %arg3[%c0_59, %c0_60] : memref<4x8xf32, #tpu.memory_space<vmem>>, vector<4x8xf32>
    tpu.vector_store %arg3[%c0_59, %c0_60], %221 {strides = array<i32>} : memref<4x8xf32, #tpu.memory_space<vmem>>, vector<4x8xf32>,
    %c0_61 = arith.constant 0 : index
    %c0_62 = arith.constant 0 : index
    %227 = vector.load %arg4[%c0_61, %c0_62] : memref<4x8xf32, #tpu.memory_space<vmem>>, vector<4x8xf32>
    tpu.vector_store %arg4[%c0_61, %c0_62], %223 {strides = array<i32>} : memref<4x8xf32, #tpu.memory_space<vmem>>, vector<4x8xf32>,
    %c0_63 = arith.constant 0 : index
    %c0_64 = arith.constant 0 : index
    %228 = vector.load %arg5[%c0_63, %c0_64] : memref<4x8xf32, #tpu.memory_space<vmem>>, vector<4x8xf32>
    tpu.vector_store %arg5[%c0_63, %c0_64], %225 {strides = array<i32>} : memref<4x8xf32, #tpu.memory_space<vmem>>, vector<4x8xf32>,
    return
  }
  func.func @transform_0(%arg0: i32) -> (i32, i32) {
    %c0_i32 = arith.constant 0 : i32
    %c0_i32_0 = arith.constant 0 : i32
    return %c0_i32, %arg0 : i32, i32
  }
  func.func @transform_1(%arg0: i32) -> (i32, i32) {
    %c0_i32 = arith.constant 0 : i32
    %c0_i32_0 = arith.constant 0 : i32
    %c0_i32_1 = arith.constant 0 : i32
    return %c0_i32, %c0_i32_0 : i32, i32
  }
  func.func @transform_2(%arg0: i32) -> (i32, i32) {
    %c0_i32 = arith.constant 0 : i32
    %c0_i32_0 = arith.constant 0 : i32
    return %c0_i32, %arg0 : i32, i32
  }
  func.func @transform_3(%arg0: i32) -> (i32, i32) {
    %c0_i32 = arith.constant 0 : i32
    %c0_i32_0 = arith.constant 0 : i32
    return %c0_i32, %arg0 : i32, i32
  }
  func.func @transform_4(%arg0: i32) -> (i32, i32) {
    %c0_i32 = arith.constant 0 : i32
    %c0_i32_0 = arith.constant 0 : i32
    return %c0_i32, %arg0 : i32, i32
  }
  func.func @transform_5(%arg0: i32) -> (i32, i32, i32) {
    %c0_i32 = arith.constant 0 : i32
    %c0_i32_0 = arith.constant 0 : i32
    %c0_i32_1 = arith.constant 0 : i32
    return %c0_i32, %c0_i32_0, %arg0 : i32, i32, i32
  }
  func.func @transform_6(%arg0: i32) -> (i32, i32, i32) {
    %c0_i32 = arith.constant 0 : i32
    %c0_i32_0 = arith.constant 0 : i32
    %c0_i32_1 = arith.constant 0 : i32
    return %c0_i32, %c0_i32_0, %arg0 : i32, i32, i32
  }
  func.func @transform_7(%arg0: i32) -> (i32, i32, i32) {
    %c0_i32 = arith.constant 0 : i32
    %c0_i32_0 = arith.constant 0 : i32
    %c0_i32_1 = arith.constant 0 : i32
    return %c0_i32, %c0_i32_0, %arg0 : i32, i32, i32
  }
}

</mosaic_0001>

<bundles_post_ra>
// kernel: tpu_custom_call.1
= control target key start
LH: loop header
LB: loop body
LE: loop exit
PB: predicated region body
PF: predicated region fallthrough
CT: control target
= control target key end

     0   :  { %13 = vsyncpa [#allocation3], 0  ;;  %s1714_s0 = inlined_call_operand.hbm [shape: f32[4,8], index: 0, kind: input, shape index: {}]   ;;  %s1715_s1 = inlined_call_operand.hbm [shape: f32[4,11], index: 1, kind: input, shape index: {}]   ;;  %s1716_s2 = inlined_call_operand.hbm [shape: f32[4,8], index: 2, kind: output, shape index: {0}]   ;;  %s1717_s3 = inlined_call_operand.hbm [shape: f32[4,8], index: 3, kind: output, shape index: {1}]   ;;  %s1718_s4 = inlined_call_operand.hbm [shape: f32[4,8], index: 4, kind: output, shape index: {2}]   ;;  %s1719_s5 = inlined_call_operand.hbm [shape: f32[4,11,8], index: 5, kind: output, shape index: {3}]   ;;  %s1720_s6 = inlined_call_operand.hbm [shape: f32[4,11,8], index: 6, kind: output, shape index: {4}]   ;;  %s1721_s7 = inlined_call_operand.hbm [shape: f32[4,11,8], index: 7, kind: output, shape index: {5}]  }
   0x1   :  { %14 = vsyncpa [#allocation6], 0 }
   0x2   :  { %15 = vsyncpa [#allocation4], 0 }
   0x3   :  { %16 = vsyncpa [#allocation9], 0 }
   0x4   :  { %17 = vsyncpa [#allocation12], 0 }
   0x5   :  { %18 = vsyncpa [#allocation15], 0  ;;  %s993_s24 = smov [#allocation2]   ;;  %s994_s26 = smov [#allocation5]  }
   0x6   :  { %s25_s25 = sshll.u32 %s993_s24, 4  ;;  %s35_s27 = sshll.u32 %s994_s26, 4  ;;  %s26_s25 = int_to_ptr.vmem [resolvable:$true] %s25_s25  ;;  %s36_s27 = int_to_ptr.vmem [resolvable:$true] %s35_s27 }
   0x7   :  { %s805_s30 = scalar_lea.hbm %s1714_s0, 64 }
   0x8   :  { %p806_p0 = scmp.ne.s32.totalorder %s1714_s0, %s805_s30  ;;  %p809_p1 = scmp.lt.u32.totalorder %s805_s30, %s1714_s0 }
   0xa   :  { %p811_p2 = pnand %p809_p1, %p806_p0 }
   0xc   :  { %814 = shalt.err (!%p811_p2)
}
   0xd   :  { %s815_s12 = scalar_lea.vmem %s26_s25, 64  ;;  %p820_p4 = scmp.lt.s32.totalorder %s26_s25, %s26_s25 }
   0xe   :  { %p816_p3 = scmp.ne.s32.totalorder %s26_s25, %s815_s12  ;;  %p821_p5 = scmp.lt.s32.totalorder %s815_s12, %s815_s12 }
  0x10   :  { %p822_p6 = por %p821_p5, %p820_p4 }
  0x12   :  { %p823_p7 = pnand %p822_p6, %p816_p3 }
  0x14   :  { %826 = shalt.err (!%p823_p7)
}
  0x15   :  { %28 = dma.hbm_to_vmem [thread:$0]  %s1714_s0, 64, %s26_s25, [#allocation3]  }
  0x16   :  { %s827_s17 = scalar_lea.hbm %s1715_s1, 64 }
  0x17   :  { %p828_p8 = scmp.ne.s32.totalorder %s1715_s1, %s827_s17  ;;  %p831_p9 = scmp.lt.u32.totalorder %s827_s17, %s1715_s1 }
  0x19   :  { %p833_p10 = pnand %p831_p9, %p828_p8 }
  0x1b   :  { %836 = shalt.err (!%p833_p10)
}
  0x1c   :  { %s837_s22 = scalar_lea.vmem %s36_s27, 64  ;;  %p842_p12 = scmp.lt.s32.totalorder %s36_s27, %s36_s27 }
  0x1d   :  { %p838_p11 = scmp.ne.s32.totalorder %s36_s27, %s837_s22  ;;  %p843_p13 = scmp.lt.s32.totalorder %s837_s22, %s837_s22 }
  0x1f   :  { %p844_p0 = por %p843_p13, %p842_p12 }
  0x21   :  { %p845_p1 = pnand %p844_p0, %p838_p11 }
  0x23   :  { %848 = shalt.err (!%p845_p1)
}
  0x24   :  { %38 = dma.hbm_to_vmem [thread:$0]  %s1715_s1, 64, %s36_s27, [#allocation6]  }
  0x25   :  { %981 = dma.done.wait [#allocation3], 64  }
  0x26   :  { %982 = vsyncadd [#allocation3], 4294967232 }
  0x27   :  { %983 = dma.done.wait [#allocation6], 64  }
  0x28   :  { %984 = vsyncadd [#allocation6], 4294967232  ;;  %v995_v0 = vmov 2   ;;  %v996_v1 = vmov 0   ;;  %v1080_v2 = vld [vmem:[#allocation5] sm:$0xf]  ;;  %v71_v14 = vlaneseq }
  0x29   :  { %795 = vset.pattern.permute.xlu1 %v995_v0  ;;  %793 = vset.pattern.permute.xlu0 %v996_v1  ;;  %v45_v3 = vld [vmem:[#allocation2] sm:$0xf]  ;;  %v997_v6 = vmov 3   ;;  %v998_v7 = vmov 1   ;;  %v999_v11 = vmov 4   ;;  %v1000_v12 = vmov 5  }
  0x2a   :  { %600 = vperm.xlu1 %795, %v1080_v2   ;;  %590 = vperm.xlu0 %793, %v1080_v2   ;;  %v764_v4 = vadd.f32 1.0, %v45_v3  ;;  %v1001_v15 = vmov 1966171168   ;;  %v72_v19 = vshrl.u32 %v71_v14, 7  ;;  %v1002_v21 = vmov 6   ;;  %s1008_s1 = smov [#allocation11]  }
  0x2b   :  { %v75_v16 = vunpack.c.l.s4 %v1001_v15  ;;  %v1003_v22 = vmov 8   ;;  %v1004_v28 = vmov 7   ;;  %v1005_v32 = vmov 10   ;;  %s709_s24 = sshll.u32 %s1008_s1, 4  ;;  %s1009_s25 = smov [#allocation13]   ;;  %s1487_s24 = int_to_ptr.vmem [resolvable:$true] %s709_s24 }
  0x2c   :  { %v47_v5 = vmul.f32 5.0, %v764_v4  ;;  %v73_v33 = vadd.s32 8, %v72_v19  ;;  %v1097_v34 = vsub.s32 0, %v72_v19  ;;  %v1006_v46 = vmov 9   ;;  %s1506_s26 = sshll.u32 %s1009_s25, 4  ;;  %s1010_s27 = smov [#allocation14]   ;;  %s1549_s26 = int_to_ptr.vmem [resolvable:$true] %s1506_s26 }
  0x2d   :  { %v76_v20 = vunpack.c.0.s8 %v75_v16  ;;  %s1518_s28 = sshll.u32 %s1010_s27, 4  ;;  %s849_s29 = scalar_lea.vmem %s1487_s24, 1024  ;;  %s1574_s28 = int_to_ptr.vmem [resolvable:$true] %s1518_s28 }
  0x2e   :  { %796 = vset.pattern.permute.xlu1 %v997_v6  ;;  %794 = vset.pattern.permute.xlu0 %v998_v7  ;;  %v48_v8 = vmul.f32 0.5, %v47_v5  ;;  %p850_p2 = scmp.ne.s32.totalorder %s1487_s24, %s849_s29  ;;  %p854_p3 = scmp.lt.s32.totalorder %s1487_s24, %s1487_s24 }
  0x2f   :  { %607 = vperm.xlu1 %796, %v1080_v2   ;;  %595 = vperm.xlu0 %794, %v1080_v2   ;;  %v1092_v25 = vsub.s32 %v76_v20, %v72_v19  ;;  %p855_p4 = scmp.lt.s32.totalorder %s849_s29, %s849_s29 }
  0x30   :  { %v49_v9 = vfloor.f32 %v48_v8 }
  0x31   :  { %p856_p5 = por %p855_p4, %p854_p3 }
  0x32   :  { %v50_v10 = vmax.f32 %v49_v9, 0.0 }
  0x33   :  { %797 = vset.pattern.permute.xlu1 %v999_v11  ;;  %798 = vset.pattern.permute.xlu0 %v1000_v12  ;;  %p857_p6 = pnand %p856_p5, %p850_p2 }
  0x34   :  { %612 = vperm.xlu1 %797, %v1080_v2   ;;  %619 = vperm.xlu0 %798, %v1080_v2   ;;  %v51_v13 = vmin.f32 %v50_v10, 4.0 }
  0x36   :  { %v768_v17 = vtrunc.f32 %v51_v13  ;;  %v53_v18 = vmul.f32 2.0, %v51_v13 }
  0x38   :  { %799 = vset.pattern.permute.xlu1 %v1002_v21  ;;  %801 = vset.pattern.permute.xlu0 %v1003_v22  ;;  %v55_v23 = vsub.f32 %v47_v5, %v53_v18  ;;  %v1090_v24 = vcvt.f32.s32 %v768_v17  ;;  %v1722_v18 = vmov 0.0  }
  0x39   :  { %624 = vperm.xlu1 %799, %v1080_v2   ;;  %636 = vperm.xlu0 %801, %v1080_v2  }
  0x3a   :  { %v54_v26 = vmul.u32 2, %v1090_v24  ;;  %v765_v27 = vadd.f32 -1.0, %v55_v23 }
  0x3c   :  { %v767_v29 = vadd.f32 -1.0, %v765_v27  ;;  %v80_v30 = vrot.slane %v54_v26, %v1092_v25  ;;  %v766_v31 = vadd.f32 1.0, %v765_v27 }
  0x3d   :  { %800 = vset.pattern.permute.xlu1 %v1004_v28  ;;  %804 = vset.pattern.permute.xlu0 %v1005_v32 }
  0x3e   :  { %631 = vperm.xlu1 %800, %v1080_v2   ;;  %v59_v35 = vmul.f32 %v767_v29, %v765_v27  ;;  %v61_v36 = vadd.f32 %v767_v29, %v765_v27  ;;  %v81_v37 = vcombine.high %v80_v30, %v80_v30  ;;  %v88_v38 = vrot.slane %v80_v30, %v1092_v25 }
  0x3f   :  { %v63_v39 = vmul.f32 %v767_v29, %v766_v31  ;;  %v65_v40 = vadd.f32 %v767_v29, %v766_v31  ;;  %v67_v41 = vmul.f32 %v766_v31, %v765_v27  ;;  %v1103_v45 = vadd.f32 %v766_v31, %v765_v27 }
  0x40   :  { %v1100_v42 = vmul.f32 0.5, %v59_v35  ;;  %v95_v43 = vrot.slane %v81_v37, %v1092_v25  ;;  %v96_v44 = vcombine.high %v88_v38, %v88_v38  ;;  %v1105_v47 = vmul.f32 2.5, %v61_v36 }
  0x41   :  { %v101_v48 = vrot.slane %v88_v38, %v1097_v34  ;;  %v1108_v49 = vmul.f32 -1.0, %v63_v39  ;;  %v1110_v50 = vmul.f32 -5.0, %v65_v40  ;;  %v1123_v58 = vmul.f32 0.5, %v67_v41 }
  0x42   :  { %1727 = vst [vmem:[#allocation22_spill] sm:$0xff] %v1100_v42  ;;  %802 = vset.pattern.permute.xlu1 %v1006_v46  ;;  %1728 = vst [vmem:[#allocation23_spill] sm:$0xff] %v1105_v47  ;;  %v97_v51 = vcombine.high %v95_v43, %v95_v43  ;;  %v105_v52 = vrot.slane %v95_v43, %v1097_v34  ;;  %v109_v53 = vrot.slane %v96_v44, %v1097_v34 }
  0x43   :  { %1729 = vst [vmem:[#allocation24_spill] sm:$0xff] %v1110_v50  ;;  %643 = vperm.xlu1 %802, %v1080_v2   ;;  %v137_v54 = vrot.slane %v1100_v42, %v1092_v25  ;;  %v1117_v55 = vsub.s32 %v72_v19, %v101_v48  ;;  %v1119_v56 = vsub.s32 %v73_v33, %v101_v48 }
  0x44   :  { %v198_v57 = vrot.slane %v1105_v47, %v1092_v25  ;;  %v113_v59 = vrot.slane %v97_v51, %v1097_v34  ;;  %v1126_v60 = vsub.s32 %v72_v19, %v105_v52  ;;  %v1128_v61 = vsub.s32 %v73_v33, %v105_v52 }
  0x45   :  { %v1130_v62 = vsub.s32 %v72_v19, %v109_v53  ;;  %v1132_v63 = vsub.s32 %v73_v33, %v109_v53  ;;  %vm122_vm0 = vcmp.eq.s32.totalorder %v1117_v55, 0  ;;  %v138_v0 = vcombine.high %v137_v54, %v137_v54 }
  0x46   :  { %v1137_v1 = vrot.slane %v1108_v49, %v1092_v25  ;;  %v1139_v3 = vsub.s32 %v72_v19, %v113_v59  ;;  %v1141_v4 = vsub.s32 %v73_v33, %v113_v59  ;;  %vm123_vm1 = vcmp.eq.s32.totalorder %v1119_v56, 0 }
  0x47   :  { %803 = vset.pattern.permute.xlu1 %v1005_v32  ;;  %vm124_vm2 = vcmp.eq.s32.totalorder %v1126_v60, 0  ;;  %vm125_vm3 = vcmp.eq.s32.totalorder %v1128_v61, 0  ;;  %vm126_vm4 = vcmp.eq.s32.totalorder %v1130_v62, 0  ;;  %v145_v5 = vrot.slane %v137_v54, %v1092_v25 }
  0x48   :  { %648 = vperm.xlu1 %803, %v1080_v2   ;;  %v152_v6 = vrot.slane %v138_v0, %v1092_v25  ;;  %vm127_vm5 = vcmp.eq.s32.totalorder %v1132_v63, 0  ;;  %vm128_vm6 = vcmp.eq.s32.totalorder %v1139_v3, 0  ;;  %v199_v7 = vcombine.high %v198_v57, %v198_v57 }
  0x49   :  { %v206_v8 = vrot.slane %v198_v57, %v1092_v25  ;;  %v153_v9 = vcombine.high %v145_v5, %v145_v5  ;;  %v158_v11 = vrot.slane %v145_v5, %v1097_v34  ;;  %vm129_vm7 = vcmp.eq.s32.totalorder %v1141_v4, 0 }
  0x4a   :  { %v154_v10 = vcombine.high %v152_v6, %v152_v6  ;;  %v162_v2 = vrot.slane %v152_v6, %v1097_v34  ;;  %v213_v12 = vrot.slane %v199_v7, %v1092_v25  ;;  %v1167_v19 = vsel %vm122_vm0, 25.0, %v1722_v18 }
  0x4b   :  { %v214_v13 = vcombine.high %v206_v8, %v206_v8  ;;  %v219_v14 = vrot.slane %v206_v8, %v1097_v34  ;;  %v166_v15 = vrot.slane %v153_v9, %v1097_v34  ;;  %v1162_v17 = vsel %vm122_vm0, %v158_v11, 0.0 }
  0x4c   :  { %v170_v16 = vrot.slane %v154_v10, %v1097_v34  ;;  %v176_v20 = vsel %vm123_vm1, %v158_v11, 0.0  ;;  %v177_v21 = vsel %vm124_vm2, %v162_v2, 0.0  ;;  %v215_v22 = vcombine.high %v213_v12, %v213_v12 }
  0x4d   :  { %v223_v23 = vrot.slane %v213_v12, %v1097_v34  ;;  %v178_v26 = vsel %vm125_vm3, %v162_v2, 0.0  ;;  %v179_v27 = vsel %vm126_vm4, %v166_v15, 0.0  ;;  %v180_v28 = vsel %vm127_vm5, %v166_v15, 0.0 }
  0x4e   :  { %v181_v29 = vsel %vm128_vm6, %v170_v16, 0.0  ;;  %v1184_v30 = vsel %vm129_vm7, %v170_v16, 0.0  ;;  %v227_v31 = vrot.slane %v214_v13, %v1097_v34  ;;  %v231_v32 = vrot.slane %v215_v22, %v1097_v34 }
  0x4f   :  { %v1190_v33 = vsel %vm122_vm0, %v219_v14, 0.0  ;;  %v1194_v35 = vsel %vm123_vm1, %v219_v14, 0.0  ;;  %v1198_v36 = vsel %vm124_vm2, %v223_v23, 0.0  ;;  %v1202_v37 = vsel %vm125_vm3, %v223_v23, 0.0 }
  0x50   :  { %v1207_v38 = vsel %vm123_vm1, 25.0, %v1722_v18  ;;  %v1211_v39 = vsel %vm126_vm4, %v227_v31, 0.0  ;;  %v1215_v40 = vsel %vm127_vm5, %v227_v31, 0.0  ;;  %v1219_v41 = vsel %vm128_vm6, %v231_v32, 0.0 }
  0x51   :  { %v1224_v43 = vsel %vm124_vm2, 25.0, %v1722_v18  ;;  %v1228_v44 = vsel %vm129_vm7, %v231_v32, 0.0  ;;  %v1233_v46 = vsel %vm125_vm3, 25.0, %v1722_v18  ;;  %v1238_v48 = vsel %vm126_vm4, 25.0, %v1722_v18 }
  0x52   :  { %v1243_v51 = vsel %vm127_vm5, 25.0, %v1722_v18  ;;  %v1248_v52 = vsel %vm128_vm6, 25.0, %v1722_v18  ;;  %vm268_vm8 = vcmp.eq.s32.totalorder %v1117_v55, 1  ;;  %vm269_vm9 = vcmp.eq.s32.totalorder %v1119_v56, 1 }
  0x53   :  { %vm270_vm10 = vcmp.eq.s32.totalorder %v1126_v60, 1  ;;  %v1256_v53 = vsel %vm129_vm7, 25.0, %v1722_v18  ;;  %vm271_vm11 = vcmp.eq.s32.totalorder %v1128_v61, 1  ;;  %vm272_vm12 = vcmp.eq.s32.totalorder %v1130_v62, 1 }
  0x54   :  { %vm273_vm13 = vcmp.eq.s32.totalorder %v1132_v63, 1  ;;  %vm274_vm14 = vcmp.eq.s32.totalorder %v1139_v3, 1  ;;  %v284_v54 = vcombine.high %v1137_v1, %v1137_v1  ;;  %v291_v57 = vrot.slane %v1137_v1, %v1092_v25 }
  0x55   :  { %v344_v59 = vrot.slane %v1110_v50, %v1092_v25  ;;  %vm275_vm15 = vcmp.eq.s32.totalorder %v1141_v4, 1  ;;  %v398_v0 = vsel %vm268_vm8, -50.0, %v1722_v18  ;;  %v399_v5 = vsel %vm269_vm9, -50.0, %v1722_v18 }
  0x56   :  { %v400_v6 = vsel %vm270_vm10, -50.0, %v1722_v18  ;;  %v298_v7 = vrot.slane %v284_v54, %v1092_v25  ;;  %v299_v1 = vcombine.high %v291_v57, %v291_v57  ;;  %v304_v8 = vrot.slane %v291_v57, %v1097_v34 }
  0x57   :  { %v345_v9 = vcombine.high %v344_v59, %v344_v59  ;;  %v352_v10 = vrot.slane %v344_v59, %v1092_v25  ;;  %v401_v11 = vsel %vm271_vm11, -50.0, %v1722_v18  ;;  %v402_v2 = vsel %vm272_vm12, -50.0, %v1722_v18 }
  0x58   :  { %v403_v12 = vsel %vm273_vm13, -50.0, %v1722_v18  ;;  %v300_v13 = vcombine.high %v298_v7, %v298_v7  ;;  %v308_v14 = vrot.slane %v298_v7, %v1097_v34  ;;  %v312_v15 = vrot.slane %v299_v1, %v1097_v34 }
  0x59   :  { %v321_v16 = vsel %vm268_vm8, %v304_v8, 0.0  ;;  %v322_v22 = vsel %vm269_vm9, %v304_v8, 0.0  ;;  %v359_v23 = vrot.slane %v345_v9, %v1092_v25  ;;  %v360_v31 = vcombine.high %v352_v10, %v352_v10 }
  0x5a   :  { %v404_v32 = vsel %vm274_vm14, -50.0, %v1722_v18  ;;  %v316_v54 = vrot.slane %v300_v13, %v1097_v34  ;;  %v323_v57 = vsel %vm270_vm10, %v308_v14, 0.0  ;;  %v324_v59 = vsel %vm271_vm11, %v308_v14, 0.0 }
  0x5b   :  { %v325_v7 = vsel %vm272_vm12, %v312_v15, 0.0  ;;  %v326_v1 = vsel %vm273_vm13, %v312_v15, 0.0  ;;  %v1310_v8 = vadd.f32 %v321_v16, %v1162_v17  ;;  %v1312_v9 = vadd.f32 %v322_v22, %v176_v20 }
  0x5c   :  { %v1314_v18 = vadd.f32 %v323_v57, %v177_v21  ;;  %v327_v13 = vsel %vm274_vm14, %v316_v54, 0.0  ;;  %v328_v47 = vsel %vm275_vm15, %v316_v54, 0.0  ;;  %v1320_v14 = vadd.f32 %v324_v59, %v178_v26 }
  0x5d   :  { %v1322_v42 = vadd.f32 %v325_v7, %v179_v27  ;;  %v1324_v50 = vadd.f32 %v326_v1, %v180_v28  ;;  %v1326_v15 = vadd.f32 %v327_v13, %v181_v29  ;;  %v361_v17 = vcombine.high %v359_v23, %v359_v23 }
  0x5e   :  { %v365_v20 = vrot.slane %v352_v10, %v1097_v34  ;;  %v1330_v21 = vadd.f32 %v328_v47, %v1184_v30  ;;  %v369_v16 = vrot.slane %v359_v23, %v1097_v34  ;;  %v373_v22 = vrot.slane %v360_v31, %v1097_v34 }
  0x5f   :  { %v1730_v57 = vmov 0.0   ;;  %v377_v27 = vrot.slane %v361_v17, %v1097_v34  ;;  %v406_v10 = vadd.f32 %v398_v0, %v1167_v19  ;;  %v1359_v0 = vadd.f32 %v399_v5, %v1207_v38 }
  0x60   :  { %v405_v26 = vsel %vm275_vm15, -50.0, %v1730_v57  ;;  %v382_v28 = vsel %vm268_vm8, %v365_v20, 0.0  ;;  %v383_v29 = vsel %vm269_vm9, %v365_v20, 0.0  ;;  %v384_v47 = vsel %vm270_vm10, %v369_v16, 0.0 }
  0x61   :  { %v385_v30 = vsel %vm271_vm11, %v369_v16, 0.0  ;;  %v386_v23 = vsel %vm272_vm12, %v373_v22, 0.0  ;;  %v387_v31 = vsel %vm273_vm13, %v373_v22, 0.0  ;;  %v388_v54 = vsel %vm274_vm14, %v377_v27, 0.0 }
  0x62   :  { %v389_v59 = vsel %vm275_vm15, %v377_v27, 0.0  ;;  %v1356_v19 = vadd.f32 %v382_v28, %v1190_v33  ;;  %v1362_v7 = vadd.f32 %v383_v29, %v1194_v35  ;;  %v1365_v1 = vadd.f32 %v384_v47, %v1198_v36 }
  0x63   :  { %v1368_v13 = vadd.f32 %v385_v30, %v1202_v37  ;;  %v1371_v17 = vadd.f32 %v386_v23, %v1211_v39  ;;  %v1374_v20 = vadd.f32 %v387_v31, %v1215_v40  ;;  %v1377_v33 = vadd.f32 %v388_v54, %v1219_v41 }
  0x64   :  { %v1380_v38 = vadd.f32 %v389_v59, %v1228_v44  ;;  %v1383_v35 = vadd.f32 %v400_v6, %v1224_v43  ;;  %v1386_v36 = vadd.f32 %v401_v11, %v1233_v46  ;;  %v1389_v37 = vadd.f32 %v402_v2, %v1238_v48 }
  0x65   :  { %v1392_v39 = vadd.f32 %v403_v12, %v1243_v51  ;;  %v1395_v40 = vadd.f32 %v404_v32, %v1248_v52  ;;  %v1398_v41 = vadd.f32 %v405_v26, %v1256_v53  ;;  %vm560_vm0 = vcmask 64512  }
  0x66   :  { %v1401_v44 = vmul.f32 2.5, %v1103_v45  ;;  %vm414_vm1 = vcmp.eq.s32.totalorder %v1117_v55, 2  ;;  %vm415_vm2 = vcmp.eq.s32.totalorder %v1119_v56, 2  ;;  %vm416_vm3 = vcmp.eq.s32.totalorder %v1126_v60, 2 }
  0x67   :  { %vm417_vm4 = vcmp.eq.s32.totalorder %v1128_v61, 2  ;;  %vm418_vm5 = vcmp.eq.s32.totalorder %v1130_v62, 2  ;;  %vm562_vm6 = vcmask 59392   ;;  %vm419_vm7 = vcmp.eq.s32.totalorder %v1132_v63, 2 }
  0x68   :  { %vm420_vm8 = vcmp.eq.s32.totalorder %v1139_v3, 2  ;;  %vm421_vm9 = vcmp.eq.s32.totalorder %v1141_v4, 2  ;;  %v429_v45 = vrot.slane %v1123_v58, %v1092_v25  ;;  %v490_v43 = vrot.slane %v1401_v44, %v1092_v25 }
  0x69   :  { %v544_v46 = vsel %vm414_vm1, 25.0, %v1730_v57  ;;  %v1421_v48 = vsel %vm415_vm2, 25.0, %v1730_v57  ;;  %v1426_v51 = vsel %vm416_vm3, 25.0, %v1730_v57  ;;  %v1432_v5 = vsel %vm417_vm4, 25.0, %v1730_v57 }
  0x6a   :  { %v430_v52 = vcombine.high %v429_v45, %v429_v45  ;;  %v437_v53 = vrot.slane %v429_v45, %v1092_v25  ;;  %v1437_v6 = vsel %vm418_vm5, 25.0, %v1730_v57  ;;  %v491_v11 = vcombine.high %v490_v43, %v490_v43 }
  0x6b   :  { %v498_v2 = vrot.slane %v490_v43, %v1092_v25  ;;  %v1443_v12 = vsel %vm419_vm7, 25.0, %v1730_v57  ;;  %v1448_v32 = vsel %vm420_vm8, 25.0, %v1730_v57  ;;  %v1455_v27 = vsel %vm421_vm9, 25.0, %v1730_v57 }
  0x6c   :  { %v444_v16 = vrot.slane %v430_v52, %v1092_v25  ;;  %v445_v22 = vcombine.high %v437_v53, %v437_v53  ;;  %v450_v26 = vrot.slane %v437_v53, %v1097_v34  ;;  %v505_v28 = vrot.slane %v491_v11, %v1092_v25 }
  0x6d   :  { %v506_v29 = vcombine.high %v498_v2, %v498_v2  ;;  %v511_v47 = vrot.slane %v498_v2, %v1097_v34  ;;  %v552_v30 = vadd.f32 %v544_v46, %v406_v10 }
  0x6e   :  { %v446_v23 = vcombine.high %v444_v16, %v444_v16  ;;  %v454_v31 = vrot.slane %v444_v16, %v1097_v34  ;;  %v458_v54 = vrot.slane %v445_v22, %v1097_v34  ;;  %v467_v59 = vsel %vm414_vm1, %v450_v26, 0.0 }
  0x6f   :  { %v468_v45 = vsel %vm415_vm2, %v450_v26, 0.0  ;;  %v475_v57 = vadd.f32 %v467_v59, %v1310_v8  ;;  %v507_v43 = vcombine.high %v505_v28, %v505_v28  ;;  %v515_v25 = vrot.slane %v505_v28, %v1097_v34  ;;  %578 = vst.msk [vmem:[#allocation14] sm:$0xff] %vm560_vm0, %v552_v30 }
  0x70   :  { %v462_v10 = vrot.slane %v446_v23, %v1097_v34  ;;  %v469_v46 = vsel %vm416_vm3, %v454_v31, 0.0  ;;  %v470_v52 = vsel %vm417_vm4, %v454_v31, 0.0  ;;  %v471_v53 = vsel %vm418_vm5, %v458_v54, 0.0 }
  0x71   :  { %v472_v8 = vsel %vm419_vm7, %v458_v54, 0.0  ;;  %v476_v11 = vadd.f32 %v468_v45, %v1312_v9  ;;  %v477_v2 = vadd.f32 %v469_v46, %v1314_v18  ;;  %v478_v16 = vadd.f32 %v470_v52, %v1320_v14  ;;  %561 = vst.msk [vmem:[#allocation11] sm:$0xff] %vm560_vm0, %v475_v57 }
  0x72   :  { %v473_v22 = vsel %vm420_vm8, %v462_v10, 0.0  ;;  %v474_v26 = vsel %vm421_vm9, %v462_v10, 0.0  ;;  %v479_v28 = vadd.f32 %v471_v53, %v1322_v42  ;;  %v480_v30 = vadd.f32 %v472_v8, %v1324_v50 }
  0x73   :  { %v481_v9 = vadd.f32 %v473_v22, %v1326_v15  ;;  %v482_v18 = vadd.f32 %v474_v26, %v1330_v21  ;;  %v519_v14 = vrot.slane %v506_v29, %v1097_v34  ;;  %v523_v23 = vrot.slane %v507_v43, %v1097_v34  ;;  %563 = vst.msk [vmem:[#allocation11 + $0x8] sm:$0x7] %vm562_vm6, %v476_v11 }
  0x74   :  { %564 = vst.msk [vmem:[#allocation11 + $0x10] sm:$0xff] %vm560_vm0, %v477_v2  ;;  %v528_v42 = vsel %vm414_vm1, %v511_v47, 0.0  ;;  %v529_v50 = vsel %vm415_vm2, %v511_v47, 0.0  ;;  %v530_v15 = vsel %vm416_vm3, %v515_v25, 0.0  ;;  %v531_v21 = vsel %vm417_vm4, %v515_v25, 0.0  ;;  %566 = vst.msk [vmem:[#allocation11 + $0x20] sm:$0xff] %vm560_vm0, %v479_v28 }
  0x75   :  { %565 = vst.msk [vmem:[#allocation11 + $0x18] sm:$0x7] %vm562_vm6, %v478_v16  ;;  %567 = vst.msk [vmem:[#allocation11 + $0x28] sm:$0x7] %vm562_vm6, %v480_v30  ;;  %v532_v34 = vsel %vm418_vm5, %v519_v14, 0.0  ;;  %v533_v55 = vsel %vm419_vm7, %v519_v14, 0.0  ;;  %v536_v61 = vadd.f32 %v528_v42, %v1356_v19  ;;  %v537_v62 = vadd.f32 %v529_v50, %v1362_v7 }
  0x76   :  { %v534_v56 = vsel %vm420_vm8, %v523_v23, 0.0  ;;  %v535_v60 = vsel %vm421_vm9, %v523_v23, 0.0  ;;  %568 = vst.msk [vmem:[#allocation11 + $0x30] sm:$0xff] %vm560_vm0, %v481_v9  ;;  %v538_v63 = vadd.f32 %v530_v15, %v1365_v1  ;;  %v539_v29 = vadd.f32 %v531_v21, %v1368_v13 }
  0x77   :  { %569 = vst.msk [vmem:[#allocation11 + $0x38] sm:$0x7] %vm562_vm6, %v482_v18 }
  0x78   :  { %860 = shalt.err (!%p857_p6)
}
  0x79   :  { %s861_s9 = scalar_lea.hbm %s1719_s5, 1024 }
  0x7a   :  { %p862_p7 = scmp.ne.s32.totalorder %s1719_s5, %s861_s9  ;;  %p865_p8 = scmp.lt.u32.totalorder %s861_s9, %s1719_s5 }
  0x7c   :  { %p867_p9 = pnand %p865_p8, %p862_p7 }
  0x7e   :  { %870 = shalt.err (!%p867_p9)
}
  0x7f   :  { %s1011_s14 = smov 128   ;;  %s1012_s15 = smov 8   ;;  %v540_v3 = vadd.f32 %v532_v34, %v1371_v17  ;;  %v541_v4 = vadd.f32 %v533_v55, %v1374_v20  ;;  %v542_v19 = vadd.f32 %v534_v56, %v1377_v33  ;;  %v543_v7 = vadd.f32 %v535_v60, %v1380_v38  ;;  %570 = vst.msk [vmem:[#allocation13] sm:$0xff] %vm560_vm0, %v536_v61 }
  0x80   :  { %715 = dma.vmem_to_hbm [thread:$0]  %s1487_s24, 1024, %s1719_s5, [#allocation12], %s1011_s14, %s1011_s14, %s1012_s15   ;;  %v553_v1 = vadd.f32 %v1421_v48, %v1359_v0  ;;  %v554_v13 = vadd.f32 %v1426_v51, %v1383_v35  ;;  %v555_v47 = vadd.f32 %v1432_v5, %v1386_v36  ;;  %v556_v17 = vadd.f32 %v1437_v6, %v1389_v37  ;;  %571 = vst.msk [vmem:[#allocation13 + $0x8] sm:$0x7] %vm562_vm6, %v537_v62 }
  0x81   :  { %572 = vst.msk [vmem:[#allocation13 + $0x10] sm:$0xff] %vm560_vm0, %v538_v63  ;;  %v557_v0 = vadd.f32 %v1443_v12, %v1392_v39  ;;  %v558_v20 = vadd.f32 %v1448_v32, %v1395_v40  ;;  %v559_v33 = vadd.f32 %v1455_v27, %v1398_v41  ;;  %574 = vst.msk [vmem:[#allocation13 + $0x20] sm:$0xff] %vm560_vm0, %v540_v3  ;;  %s871_s5 = scalar_lea.vmem %s1549_s26, 1024  ;;  %p876_p11 = scmp.lt.s32.totalorder %s1549_s26, %s1549_s26 }
  0x82   :  { %573 = vst.msk [vmem:[#allocation13 + $0x18] sm:$0x7] %vm562_vm6, %v539_v29  ;;  %575 = vst.msk [vmem:[#allocation13 + $0x28] sm:$0x7] %vm562_vm6, %v541_v4  ;;  %p872_p10 = scmp.ne.s32.totalorder %s1549_s26, %s871_s5  ;;  %p877_p12 = scmp.lt.s32.totalorder %s871_s5, %s871_s5 }
  0x83   :  { %576 = vst.msk [vmem:[#allocation13 + $0x30] sm:$0xff] %vm560_vm0, %v542_v19  ;;  %580 = vst.msk [vmem:[#allocation14 + $0x10] sm:$0xff] %vm560_vm0, %v554_v13 }
  0x84   :  { %577 = vst.msk [vmem:[#allocation13 + $0x38] sm:$0x7] %vm562_vm6, %v543_v7  ;;  %579 = vst.msk [vmem:[#allocation14 + $0x8] sm:$0x7] %vm562_vm6, %v553_v1  ;;  %p878_p13 = por %p877_p12, %p876_p11 }
  0x85   :  { %581 = vst.msk [vmem:[#allocation14 + $0x18] sm:$0x7] %vm562_vm6, %v555_v47 }
  0x86   :  { %582 = vst.msk [vmem:[#allocation14 + $0x20] sm:$0xff] %vm560_vm0, %v556_v17  ;;  %p879_p0 = pnand %p878_p13, %p872_p10 }
  0x88   :  { %882 = shalt.err (!%p879_p0)
}
  0x89   :  { %s883_s20 = scalar_lea.hbm %s1720_s6, 1024 }
  0x8a   :  { %p884_p1 = scmp.ne.s32.totalorder %s1720_s6, %s883_s20  ;;  %p887_p2 = scmp.lt.u32.totalorder %s883_s20, %s1720_s6 }
  0x8c   :  { %p889_p3 = pnand %p887_p2, %p884_p1 }
  0x8e   :  { %892 = shalt.err (!%p889_p3)
}
  0x8f   :  { %727 = dma.vmem_to_hbm [thread:$0]  %s1549_s26, 1024, %s1720_s6, [#allocation12], %s1011_s14, %s1011_s14, %s1012_s15   ;;  %583 = vst.msk [vmem:[#allocation14 + $0x28] sm:$0x7] %vm562_vm6, %v557_v0  ;;  %585 = vst.msk [vmem:[#allocation14 + $0x38] sm:$0x7] %vm562_vm6, %v559_v33 }
  0x90   :  { %584 = vst.msk [vmem:[#allocation14 + $0x30] sm:$0xff] %vm560_vm0, %v558_v20  ;;  %s893_s25 = scalar_lea.vmem %s1574_s28, 1024  ;;  %p898_p5 = scmp.lt.s32.totalorder %s1574_s28, %s1574_s28 }
  0x91   :  { %p894_p4 = scmp.ne.s32.totalorder %s1574_s28, %s893_s25  ;;  %p899_p6 = scmp.lt.s32.totalorder %s893_s25, %s893_s25 }
  0x93   :  { %p900_p7 = por %p899_p6, %p898_p5 }
  0x95   :  { %p901_p8 = pnand %p900_p7, %p894_p4 }
  0x97   :  { %904 = shalt.err (!%p901_p8)
}
  0x98   :  { %s905_s30 = scalar_lea.hbm %s1721_s7, 1024 }
  0x99   :  { %p906_p9 = scmp.ne.s32.totalorder %s1721_s7, %s905_s30  ;;  %p909_p10 = scmp.lt.u32.totalorder %s905_s30, %s1721_s7 }
  0x9b   :  { %p911_p11 = pnand %p909_p10, %p906_p9 }
  0x9d   :  { %914 = shalt.err (!%p911_p11)
}
  0x9e   :  { %739 = dma.vmem_to_hbm [thread:$0]  %s1574_s28, 1024, %s1721_s7, [#allocation15], %s1011_s14, %s1011_s14, %s1012_s15   ;;  %vm587_vm10 = vcmp.eq.s32.totalorder %v1090_v24, 0  ;;  %vm604_vm11 = vcmp.eq.s32.totalorder %v1090_v24, 1  ;;  %vm616_vm12 = vcmp.eq.s32.totalorder %v1090_v24, 2  ;;  %vm628_vm13 = vcmp.eq.s32.totalorder %v1090_v24, 3 }
  0x9f   :  { %vm640_vm14 = vcmp.eq.s32.totalorder %v1090_v24, 4  ;;  %v1731_v53 = vld [vmem:[#allocation24_spill] sm:$0xff]  ;;  %v1732_v2 = vld [vmem:[#allocation22_spill] sm:$0xff]  ;;  %v1733_v22 = vld [vmem:[#allocation23_spill] sm:$0xff]  ;;  %s1013_s7 = smov [#allocation8]   ;;  %s1014_s12 = smov [#allocation7]  }
  0xa0   :  { %s690_s28 = sshll.u32 %s1013_s7, 4  ;;  %s680_s13 = sshll.u32 %s1014_s12, 4  ;;  %vm670_vm15 = vcmask 60416   ;;  %s691_s28 = int_to_ptr.vmem [resolvable:$true] %s690_s28  ;;  %s1664_s13 = int_to_ptr.vmem [resolvable:$true] %s680_s13 }
  0xa1   :  { %s1015_s14 = smov [#allocation10]   ;;  %s915_s16 = scalar_lea.vmem %s691_s28, 64 }
  0xa2   :  { %s700_s15 = sshll.u32 %s1015_s14, 4  ;;  %p916_p12 = scmp.ne.s32.totalorder %s691_s28, %s915_s16  ;;  %s1666_s15 = int_to_ptr.vmem [resolvable:$true] %s700_s15 }
  0xa3   :  { %p920_p13 = scmp.lt.s32.totalorder %s691_s28, %s691_s28  ;;  %p921_p0 = scmp.lt.s32.totalorder %s915_s16, %s915_s16 }
  0xa5   :  { %p922_p1 = por %p921_p0, %p920_p13 }
  0xa7   :  { %p923_p2 = pnand %p922_p1, %p916_p12 }
  0xa9   :  { %v601_v38 = vpop.permute.xlu1 %600  ;;  %v591_v36 = vpop.permute.xlu0 %590 }
  0xaa   :  { %v593_v41 = vsel %vm587_vm10, %v591_v36, 0.0  ;;  %v603_v59 = vsel %vm587_vm10, %v601_v38, 0.0 }
  0xab   :  { %v605_v6 = vsel %vm604_vm11, %v601_v38, %v593_v41 }
  0xae   :  { %v608_v35 = vpop.permute.xlu1 %607  ;;  %v596_v39 = vpop.permute.xlu0 %595 }
  0xaf   :  { %v598_v51 = vsel %vm587_vm10, %v596_v39, 0.0 }
  0xb0   :  { %v610_v32 = vsel %vm604_vm11, %v608_v35, %v598_v51 }
  0xb3   :  { %v613_v37 = vpop.permute.xlu1 %612  ;;  %v620_v48 = vpop.permute.xlu0 %619 }
  0xb4   :  { %v617_v12 = vsel %vm616_vm12, %v613_v37, %v605_v6  ;;  %v622_v54 = vsel %vm616_vm12, %v620_v48, %v610_v32  ;;  %v615_v43 = vsel %vm604_vm11, %v613_v37, %v603_v59 }
  0xb8   :  { %v625_v40 = vpop.permute.xlu1 %624  ;;  %v637_v31 = vpop.permute.xlu0 %636 }
  0xb9   :  { %v629_v27 = vsel %vm628_vm13, %v625_v40, %v617_v12  ;;  %v627_v46 = vsel %vm616_vm12, %v625_v40, %v615_v43 }
  0xba   :  { %v641_v25 = vsel %vm640_vm14, %v637_v31, %v629_v27  ;;  %v639_v28 = vsel %vm628_vm13, %v637_v31, %v627_v46 }
  0xbb   :  { %v652_v16 = vmul.f32 %v641_v25, %v1732_v2  ;;  %v654_v26 = vmul.f32 %v641_v25, %v1733_v22  ;;  %v656_v30 = vmul.f32 25.0, %v641_v25 }
  0xbd   :  { %v632_v5 = vpop.permute.xlu1 %631 }
  0xbe   :  { %v634_v45 = vsel %vm628_vm13, %v632_v5, %v622_v54 }
  0xc2   :  { %v644_v57 = vpop.permute.xlu1 %643 }
  0xc3   :  { %v646_v10 = vsel %vm640_vm14, %v644_v57, %v634_v45 }
  0xc4   :  { %v658_v52 = vmul.f32 %v646_v10, %v1108_v49  ;;  %v660_v8 = vmul.f32 %v646_v10, %v1731_v53  ;;  %v662_v11 = vmul.f32 -50.0, %v646_v10 }
  0xc6   :  { %v659_v18 = vadd.f32 %v658_v52, %v652_v16  ;;  %v661_v14 = vadd.f32 %v660_v8, %v654_v26  ;;  %v663_v49 = vadd.f32 %v662_v11, %v656_v30 }
  0xc7   :  { %v649_v9 = vpop.permute.xlu1 %648 }
  0xc8   :  { %v651_v23 = vsel %vm640_vm14, %v649_v9, %v639_v28 }
  0xc9   :  { %v664_v42 = vmul.f32 %v651_v23, %v1123_v58  ;;  %v666_v50 = vmul.f32 %v651_v23, %v1401_v44  ;;  %v668_v15 = vmul.f32 25.0, %v651_v23 }
  0xcb   :  { %v665_v21 = vadd.f32 %v664_v42, %v659_v18  ;;  %v667_v34 = vadd.f32 %v666_v50, %v661_v14  ;;  %v669_v55 = vadd.f32 %v668_v15, %v663_v49 }
  0xcd   :  { %672 = vst.msk [vmem:[#allocation8] sm:$0xf] %vm670_vm15, %v667_v34  ;;  %671 = vst.msk [vmem:[#allocation7] sm:$0xf] %vm670_vm15, %v665_v21 }
  0xce   :  { %673 = vst.msk [vmem:[#allocation10] sm:$0xf] %vm670_vm15, %v669_v55 }
  0xcf   :  { %926 = shalt.err (!%p923_p2)
}
  0xd0   :  { %s927_s18 = scalar_lea.hbm %s1717_s3, 64 }
  0xd1   :  { %p928_p3 = scmp.ne.s32.totalorder %s1717_s3, %s927_s18  ;;  %p931_p4 = scmp.lt.u32.totalorder %s927_s18, %s1717_s3 }
  0xd3   :  { %p933_p5 = pnand %p931_p4, %p928_p3 }
  0xd5   :  { %936 = shalt.err (!%p933_p5)
}
  0xd6   :  { %693 = dma.vmem_to_hbm [thread:$0]  %s691_s28, 64, %s1717_s3, [#allocation9]  }
  0xd7   :  { %s937_s1 = scalar_lea.vmem %s1664_s13, 64  ;;  %p942_p7 = scmp.lt.s32.totalorder %s1664_s13, %s1664_s13 }
  0xd8   :  { %p938_p6 = scmp.ne.s32.totalorder %s1664_s13, %s937_s1  ;;  %p943_p8 = scmp.lt.s32.totalorder %s937_s1, %s937_s1 }
  0xda   :  { %p944_p9 = por %p943_p8, %p942_p7 }
  0xdc   :  { %p945_p10 = pnand %p944_p9, %p938_p6 }
  0xde   :  { %948 = shalt.err (!%p945_p10)
}
  0xdf   :  { %s949_s27 = scalar_lea.hbm %s1716_s2, 64 }
  0xe0   :  { %p950_p11 = scmp.ne.s32.totalorder %s1716_s2, %s949_s27  ;;  %p953_p12 = scmp.lt.u32.totalorder %s949_s27, %s1716_s2 }
  0xe2   :  { %p955_p13 = pnand %p953_p12, %p950_p11 }
  0xe4   :  { %958 = shalt.err (!%p955_p13)
}
  0xe5   :  { %683 = dma.vmem_to_hbm [thread:$0]  %s1664_s13, 64, %s1716_s2, [#allocation4]  }
  0xe6   :  { %s959_s9 = scalar_lea.vmem %s1666_s15, 64  ;;  %p964_p1 = scmp.lt.s32.totalorder %s1666_s15, %s1666_s15 }
  0xe7   :  { %p960_p0 = scmp.ne.s32.totalorder %s1666_s15, %s959_s9  ;;  %p965_p2 = scmp.lt.s32.totalorder %s959_s9, %s959_s9 }
  0xe9   :  { %p966_p3 = por %p965_p2, %p964_p1 }
  0xeb   :  { %p967_p4 = pnand %p966_p3, %p960_p0 }
  0xed   :  { %970 = shalt.err (!%p967_p4)
}
  0xee   :  { %s971_s7 = scalar_lea.hbm %s1718_s4, 64 }
  0xef   :  { %p972_p5 = scmp.ne.s32.totalorder %s1718_s4, %s971_s7  ;;  %p975_p6 = scmp.lt.u32.totalorder %s971_s7, %s1718_s4 }
  0xf1   :  { %p977_p7 = pnand %p975_p6, %p972_p5 }
  0xf3   :  { %980 = shalt.err (!%p977_p7)
}
  0xf4   :  { %703 = dma.vmem_to_hbm [thread:$0]  %s1666_s15, 64, %s1718_s4, [#allocation9]  }
  0xf5   :  { %985 = dma.done.wait [#allocation4], 64  }
  0xf6   :  { %986 = vsyncadd [#allocation4], 4294967232 }
  0xf7   :  { %987 = dma.done.wait [#allocation9], 128  }
  0xf8   :  { %988 = vsyncadd [#allocation9], 4294967168 }
  0xf9   :  { %989 = dma.done.wait [#allocation12], 2048  }
  0xfa   :  { %990 = vsyncadd [#allocation12], 4294965248 }
  0xfb   :  { %991 = dma.done.wait [#allocation15], 1024  }
  0xfc   :  { %992 = vsyncadd [#allocation15], 4294966272 }
  0xfd   :  { %758 = vsyncpa [#allocation3], 1 }
  0xfe   :  { %759 = vsyncpa [#allocation6], 1 }
  0xff   :  { %760 = vsyncpa [#allocation4], 1 }
 0x100   :  { %761 = vsyncpa [#allocation9], 1 }
 0x101   :  { %762 = vsyncpa [#allocation12], 1 }
 0x102   :  { %763 = vsyncpa [#allocation15], 1 }

</bundles_post_ra>
